<compile_context>
chip_gen: v7x
topology: tpu7x:2x2x1
jax: 0.10.0
libtpu: 0.0.40
codegen_flags: <defaults>
</compile_context>

<pallas_src>
import jax
import jax.numpy as jnp
from jax.experimental import pallas as pl
from jax.experimental.pallas import tpu as pltpu


_DEFAULT_TILE_BUDGET_BYTES = 16 << 20   # budget for the double-buffered W^T tile


def _round_up(x, m):
    return ((x + m - 1) // m) * m


def _detect_num_cores():
    """Best-effort TensorCores-per-chip detection (1 on v5e/v6e)."""
    # TODO(synk): on v7x, a hard guarantee of dual-TC sharding needs
    # pltpu.CORE_PARALLEL / pl.core_map; a plain "parallel" outer axis only splits the grid.
    try:
        return max(1, int(getattr(jax.devices()[0], "num_cores", 1)))
    except Exception:
        return 1


def _resolve_n_outer(d, n_outer):
    if n_outer is None:
        n_outer = _detect_num_cores()
    return max(1, min(int(n_outer), 2, max(1, d // 256)))


def _choose_tiling(d, c, n_outer, max_tile_d, budget_bytes, itemsize):
    """Lane (D) tiling: biggest tile within the VMEM budget, minimal zero padding."""
    per_core = pl.cdiv(d, n_outer)
    per_core_padded = _round_up(per_core, 128)
    # cap from the double-buffered (C, tile_d) streaming tile
    cap = (budget_bytes // (2 * max(c, 8) * itemsize)) // 128 * 128
    tile_cap = max(128, min(_round_up(max_tile_d, 128), max(128, cap), per_core_padded))
    n_inner = pl.cdiv(per_core_padded, tile_cap)
    # balance the tiles so the total padding is < 128 * n_inner * n_outer lanes
    tile_d = _round_up(pl.cdiv(per_core_padded, n_inner), 128)
    d_needed = n_outer * n_inner * tile_d
    return tile_d, n_inner, d_needed


def _gram_sumsq_kernel(m_ref, wt_ref, out_ref, acc_ref):
    """Accumulate G = W^T W over lane (D) tiles; emit sum(M * G) per outer block.

    grid = (n_outer, n_inner): axis 0 optionally splits D across TensorCores
    (parallel), axis 1 walks the D tiles of that range (arbitrary / reduction).
    """
    k = pl.program_id(1)

    @pl.when(k == 0)
    def _():
        acc_ref[...] = jnp.zeros_like(acc_ref)

    w = wt_ref[...]                                          # (C, tile_d) bf16
    # G_partial += w @ w^T: contraction over the full lane (D) tile -> K = tile_d
    # on the MXU, f32 accumulation; the only per-step VMEM state is the tiny (C, C).
    acc_ref[...] += jax.lax.dot_general(
        w, w,
        dimension_numbers=(((1,), (1,)), ((), ())),
        preferred_element_type=jnp.float32)

    # Final weighted reduction once per outer block, on the last tile only.
    @pl.when(k == pl.num_programs(1) - 1)
    def _():
        out_ref[...] = jnp.full(
            (1, 1), jnp.sum(m_ref[...] * acc_ref[...]), jnp.float32)


def jacobian_gram_sumsq(m, w_t, *, max_tile_d=8192, n_outer=None,
                        tile_budget_bytes=_DEFAULT_TILE_BUDGET_BYTES):
    """sum_i ||v_i @ w_t||^2 = <M, w_t @ w_t^T>_F with M = V^T V, via one Pallas call.

    m   : (C, C)  projection Gram matrix V^T V (f32)
    w_t : (C, D)  transposed weight, D on the lane axis (streamed from HBM once)
    """
    c, c2 = m.shape
    assert c == c2, m.shape
    cw, d = w_t.shape
    assert cw == c, (m.shape, w_t.shape)
    m = m.astype(jnp.float32)

    n_outer = _resolve_n_outer(d, n_outer)
    tile_d, n_inner, d_needed = _choose_tiling(
        d, c, n_outer, max_tile_d, tile_budget_bytes, w_t.dtype.itemsize)
    if d_needed != d:
        # Fallback only: prefer one-time padding in prepare_weight (zero columns add 0 to G).
        w_t = jnp.pad(w_t, ((0, 0), (0, d_needed - d)))

    # Explicit VMEM budget: double-buffered W^T tile + resident M + (C, C) acc.
    cc_pad_bytes = max(c, 8) * max(c, 128) * 4
    footprint = 2 * c * tile_d * w_t.dtype.itemsize + 3 * cc_pad_bytes + (1 << 16)
    vmem_limit = int(min(max(2 * footprint, 8 << 20), 48 << 20))

    out = pl.pallas_call(
        _gram_sumsq_kernel,
        out_shape=jax.ShapeDtypeStruct((n_outer, 1, 1), jnp.float32),
        grid_spec=pltpu.PrefetchScalarGridSpec(
            num_scalar_prefetch=0,
            grid=(n_outer, n_inner),
            in_specs=[
                # M stays VMEM-resident (same block every step -> no re-DMA)
                pl.BlockSpec((c, c), lambda o, k: (0, 0)),
                # W^T: D tiles; the outer axis owns a contiguous range of D
                pl.BlockSpec((c, tile_d), lambda o, k: (0, o * n_inner + k)),
            ],
            # one (1, 1) partial sum per outer chunk
            out_specs=pl.BlockSpec((None, 1, 1), lambda o, k: (o, 0, 0)),
            scratch_shapes=[pltpu.VMEM((c, c), jnp.float32)],
        ),
        compiler_params=pltpu.CompilerParams(
            dimension_semantics=("parallel", "arbitrary"),
            vmem_limit_bytes=vmem_limit),
    )(m, w_t)
    return jnp.sum(out)


class JacobianRegularization:
    """JAX/Pallas port of the PyTorch JacobianRegularization module."""

    def __init__(self, num_projections=1, weight_dtype=jnp.bfloat16):
        self.num_projections = num_projections
        # Streaming dtype for W^T (bf16 halves HBM bytes; MXU accumulates in f32).
        # On v7x, fp8 (e4m3) with a scale would halve bytes again if the tolerance allows.
        self.weight_dtype = weight_dtype

    @staticmethod
    def prepare_weight(w, weight_dtype=jnp.bfloat16, max_tile_d=8192, n_outer=None,
                       tile_budget_bytes=_DEFAULT_TILE_BUDGET_BYTES):
        """(D, C) weight -> (C, D_padded) streaming operand (do ONCE per weight).

        Transpose + cast + lane zero-padding happen here, outside the per-forward
        hot path, so the kernel's cost is exactly one HBM pass over W^T."""
        w_t = jnp.asarray(w, weight_dtype).T
        c, d = w_t.shape
        n_outer = _resolve_n_outer(d, n_outer)
        _, _, d_needed = _choose_tiling(
            d, c, n_outer, max_tile_d, tile_budget_bytes, w_t.dtype.itemsize)
        if d_needed != d:
            w_t = jnp.pad(w_t, ((0, 0), (0, d_needed - d)))
        return w_t

    @staticmethod
    def _compute_normalized_vector(key, batch_size, num_channels):
        if num_channels == 1:
            return jnp.ones((batch_size, 1), jnp.float32)
        v = jax.random.normal(key, (batch_size, num_channels), jnp.float32)
        norm = jnp.linalg.norm(v, ord=2, axis=1, keepdims=True)
        return v / norm  # addcdiv(zeros, 1.0, v, norm)

    def _projection_gram(self, key, b, c, num_projections):
        """M = sum_p v_p^T v_p, shape (C, C); never materializes a stacked v in VMEM."""
        if num_projections == c:
            # one-hot basis vectors e_i, each repeated over the batch rows -> V^T V = B * I
            return jnp.float32(b) * jnp.eye(c, dtype=jnp.float32)
        vs = []
        for _ in range(num_projections):
            key, sub = jax.random.split(key)
            vs.append(self._compute_normalized_vector(sub, b, c))
        v = jnp.concatenate(vs, axis=0)                       # (P*B, C), tiny
        return jax.lax.dot_general(
            v, v, dimension_numbers=(((0,), (0,)), ((), ())),
            precision=jax.lax.Precision.HIGHEST)

    def __call__(self, x, z, key, *, w=None, w_t=None, max_tile_d=8192):
        del x  # with the synthetic linear head, the VJP depends only on W
        assert (w is None) != (w_t is None), "pass exactly one of w / w_t"
        b, c = z.shape
        num_projections = self.num_projections
        if num_projections == -1:
            num_projections = c
        if w_t is None:
            w_t = self.prepare_weight(w, self.weight_dtype, max_tile_d=max_tile_d)
        m = self._projection_gram(key, b, c, num_projections)           # (C, C)
        sumsq = jacobian_gram_sumsq(m, w_t, max_tile_d=max_tile_d)      # Pallas
        J_F = c * sumsq / (num_projections * b)
        return 0.5 * J_F


def _reference_loss(x, z, w, key, num_projections, w_cast_dtype=None):
    """Pure-JAX reference using jax.vjp (mirrors torch.autograd.grad).

    With w_cast_dtype set, W is rounded through that dtype first so the reference
    matches the kernel's bf16-streaming numerics (projections stay f32 in both)."""
    b, c = z.shape
    if num_projections == -1:
        num_projections = c
    w_use = w
    if w_cast_dtype is not None:
        w_use = w.astype(w_cast_dtype).astype(jnp.float32)

    def f(x_in):
        return jnp.dot(x_in.reshape(b, -1), w_use,
                       precision=jax.lax.Precision.HIGHEST)

    _, vjp_fn = jax.vjp(f, x)
    J_F = jnp.float32(0.0)
    for i in range(num_projections):
        if num_projections == c:
            v = jnp.zeros((b, c), jnp.float32).at[:, i].set(1.0)
        else:
            key, sub = jax.random.split(key)
            vv = jax.random.normal(sub, (b, c), jnp.float32)
            v = vv / jnp.linalg.norm(vv, ord=2, axis=1, keepdims=True)
        (j,) = vjp_fn(v)
        J_F = J_F + c * jnp.sum(j * j) / (num_projections * b)
    return 0.5 * J_F


if __name__ == "__main__":
    root = jax.random.PRNGKey(0)
    kx1, kw1, kv1, kx2, kw2, kv2 = jax.random.split(root, 6)

    # ---- test 1: batch=2, channels=4, spatial=16x16, 1 random projection ----
    B, C, H, Wsp = 2, 4, 16, 16
    Cout = 8
    D = C * H * Wsp                                                   # 1024

    x = jax.random.normal(kx1, (B, C, H, Wsp), jnp.float32)           # NCHW input
    Wmat = 0.05 * jax.random.normal(kw1, (D, Cout), jnp.float32)      # synthetic head
    z = x.reshape(B, D) @ Wmat                                        # (B, Cout)

    reg = JacobianRegularization(num_projections=1)
    w_t = JacobianRegularization.prepare_weight(Wmat)   # transpose + bf16 + pad ONCE
    loss = jax.block_until_ready(reg(x, z, kv1, w_t=w_t))

    # Tight check vs a reference that emulates the bf16 W streaming operand.
    loss_ref_bf16 = jax.block_until_ready(
        _reference_loss(x, z, Wmat, kv1, 1, w_cast_dtype=jnp.bfloat16))
    assert jnp.allclose(loss, loss_ref_bf16, rtol=1e-3, atol=1e-6), (loss, loss_ref_bf16)
    # Loose check vs the exact f32 autodiff reference (bf16 streaming error only).
    loss_ref = jax.block_until_ready(_reference_loss(x, z, Wmat, kv1, 1))
    assert jnp.allclose(loss, loss_ref, rtol=5e-2, atol=1e-6), (loss, loss_ref)

    # ---- test 2: ragged D (720) + num_projections=-1 (all one-hot channels) ----
    B2, C2, H2, Wsp2 = 2, 3, 15, 16
    Cout2 = 8
    D2 = C2 * H2 * Wsp2                                               # 720

    x2 = jax.random.normal(kx2, (B2, C2, H2, Wsp2), jnp.float32)
    Wmat2 = 0.05 * jax.random.normal(kw2, (D2, Cout2), jnp.float32)
    z2 = x2.reshape(B2, D2) @ Wmat2

    reg2 = JacobianRegularization(num_projections=-1)
    loss2 = jax.block_until_ready(reg2(x2, z2, kv2, w=Wmat2))
    loss2_ref_bf16 = jax.block_until_ready(
        _reference_loss(x2, z2, Wmat2, kv2, -1, w_cast_dtype=jnp.bfloat16))
    assert jnp.allclose(loss2, loss2_ref_bf16, rtol=1e-3, atol=1e-6), (loss2, loss2_ref_bf16)
    loss2_ref = jax.block_until_ready(_reference_loss(x2, z2, Wmat2, kv2, -1))
    assert jnp.allclose(loss2, loss2_ref, rtol=5e-2, atol=1e-6), (loss2, loss2_ref)

    print("KERNEL_OK")
</pallas_src>

<mosaic_0001>
module attributes {stable_mosaic.version = 11 : i64} {
  func.func @_gram_sumsq_kernel(%arg0: i32, %arg1: i32, %arg2: memref<8x8xf32, #tpu.memory_space<vmem>>, %arg3: memref<8x1024xbf16, #tpu.memory_space<vmem>>, %arg4: memref<1x1x1xf32, #tpu.memory_space<vmem>>, %arg5: memref<8x8xf32, #tpu.memory_space<vmem>>) attributes {dimension_semantics = [#tpu.dimension_semantics<parallel>, #tpu.dimension_semantics<arbitrary>], iteration_bounds = array<i64: 1, 1>, scalar_prefetch = 0 : i64, scratch_operands = 1 : i64, tpu.core_type = #tpu.core_type<tc>, window_params = [{pipeline_mode = #tpu.pipeline_mode<synchronous>, transform_indices = @transform_0, window_bounds = array<i64: 8, 8>}, {transform_indices = @transform_1, window_bounds = array<i64: 8, 1024>}, {transform_indices = @transform_2, window_bounds = array<i64: 1, 1, 1>}]} {
    %c0_i32 = arith.constant 0 : i32
    %0 = arith.cmpi eq, %arg1, %c0_i32 : i32
    %1 = arith.extui %0 : i1 to i32
    %c0_i32_0 = arith.constant 0 : i32
    %2 = arith.cmpi ne, %1, %c0_i32_0 : i32
    scf.if %2 {
      %cst_8 = arith.constant 0.000000e+00 : f32
      %11 = vector.broadcast %cst_8 : f32 to vector<8x8xf32>
      %c0_9 = arith.constant 0 : index
      %c0_10 = arith.constant 0 : index
      %12 = vector.load %arg5[%c0_9, %c0_10] : memref<8x8xf32, #tpu.memory_space<vmem>>, vector<8x8xf32>
      tpu.vector_store %arg5[%c0_9, %c0_10], %11 {strides = array<i32>} : memref<8x8xf32, #tpu.memory_space<vmem>>, vector<8x8xf32>,
    } else {
    }
    %c0 = arith.constant 0 : index
    %c0_1 = arith.constant 0 : index
    %3 = vector.load %arg3[%c0, %c0_1] : memref<8x1024xbf16, #tpu.memory_space<vmem>>, vector<8x1024xbf16>
    %c0_2 = arith.constant 0 : index
    %c0_3 = arith.constant 0 : index
    %4 = vector.load %arg5[%c0_2, %c0_3] : memref<8x8xf32, #tpu.memory_space<vmem>>, vector<8x8xf32>
    %cst = arith.constant dense<0.000000e+00> : vector<8x8xf32>
    %5 = tpu.matmul %3, %3, %cst {dimension_numbers = #tpu.dot_dimension_numbers<[1], [1], [0], [0], [0, 0, 1, 0], [], []>} : vector<8x1024xbf16>, vector<8x1024xbf16>, vector<8x8xf32> -> vector<8x8xf32>
    %6 = arith.addf %4, %5 : vector<8x8xf32>
    %c0_4 = arith.constant 0 : index
    %c0_5 = arith.constant 0 : index
    %7 = vector.load %arg5[%c0_4, %c0_5] : memref<8x8xf32, #tpu.memory_space<vmem>>, vector<8x8xf32>
    tpu.vector_store %arg5[%c0_4, %c0_5], %6 {strides = array<i32>} : memref<8x8xf32, #tpu.memory_space<vmem>>, vector<8x8xf32>,
    %c0_i32_6 = arith.constant 0 : i32
    %8 = arith.cmpi eq, %arg1, %c0_i32_6 : i32
    %9 = arith.extui %8 : i1 to i32
    %c0_i32_7 = arith.constant 0 : i32
    %10 = arith.cmpi ne, %9, %c0_i32_7 : i32
    scf.if %10 {
      %c0_8 = arith.constant 0 : index
      %c0_9 = arith.constant 0 : index
      %11 = vector.load %arg2[%c0_8, %c0_9] : memref<8x8xf32, #tpu.memory_space<vmem>>, vector<8x8xf32>
      %c0_10 = arith.constant 0 : index
      %c0_11 = arith.constant 0 : index
      %12 = vector.load %arg5[%c0_10, %c0_11] : memref<8x8xf32, #tpu.memory_space<vmem>>, vector<8x8xf32>
      %13 = arith.mulf %11, %12 : vector<8x8xf32>
      %14 = vector.shape_cast %13 : vector<8x8xf32> to vector<1x8x8xf32>
      %cst_12 = arith.constant dense<0.000000e+00> : vector<1xf32>
      %15 = vector.multi_reduction <add>, %14, %cst_12 [1, 2] : vector<1x8x8xf32> to vector<1xf32>
      %16 = vector.shape_cast %15 : vector<1xf32> to vector<1x1x1xf32>
      %17 = vector.extract %16[0, 0, 0] : f32 from vector<1x1x1xf32>
      %18 = vector.broadcast %17 : f32 to vector<1x1xf32>
      %c0_13 = arith.constant 0 : index
      %c0_14 = arith.constant 0 : index
      %c0_15 = arith.constant 0 : index
      %19 = vector.load %arg4[%c0_13, %c0_14, %c0_15] : memref<1x1x1xf32, #tpu.memory_space<vmem>>, vector<1x1x1xf32>
      %20 = vector.shape_cast %19 : vector<1x1x1xf32> to vector<1x1xf32>
      %21 = vector.shape_cast %18 : vector<1x1xf32> to vector<1x1x1xf32>
      tpu.vector_store %arg4[%c0_13, %c0_14, %c0_15], %21 {strides = array<i32>} : memref<1x1x1xf32, #tpu.memory_space<vmem>>, vector<1x1x1xf32>,
    } else {
    }
    return
  }
  func.func @transform_0(%arg0: i32, %arg1: i32) -> (i32, i32) {
    %c0_i32 = arith.constant 0 : i32
    %c0_i32_0 = arith.constant 0 : i32
    %c0_i32_1 = arith.constant 0 : i32
    return %c0_i32, %c0_i32_0 : i32, i32
  }
  func.func @transform_1(%arg0: i32, %arg1: i32) -> (i32, i32) {
    %c1_i32 = arith.constant 1 : i32
    %0 = arith.muli %arg0, %c1_i32 : i32
    %1 = arith.addi %0, %arg1 : i32
    %c0_i32 = arith.constant 0 : i32
    %c0_i32_0 = arith.constant 0 : i32
    return %c0_i32, %1 : i32, i32
  }
  func.func @transform_2(%arg0: i32, %arg1: i32) -> (i32, i32, i32) {
    %c0_i32 = arith.constant 0 : i32
    %c0_i32_0 = arith.constant 0 : i32
    %c0_i32_1 = arith.constant 0 : i32
    return %arg0, %c0_i32, %c0_i32_0 : i32, i32, i32
  }
}

</mosaic_0001>

<bundles_post_ra>
// kernel: tpu_custom_call.1
= control target key start
LH: loop header
LB: loop body
LE: loop exit
PB: predicated region body
PF: predicated region fallthrough
CT: control target
= control target key end

     0   :  { %7 = vsyncpa [#allocation4], 0  ;;  %s432_s0 = inlined_call_operand.hbm [shape: f32[8,8], index: 0, kind: input, shape index: {}]   ;;  %s433_s1 = inlined_call_operand.hbm [shape: bf16[8,1024], index: 1, kind: input, shape index: {}]   ;;  %s434_s2 = inlined_call_operand.hbm [shape: f32[1,1,1], index: 2, kind: output, shape index: {}]  }
   0x1   :  { %8 = vsyncpa [#allocation7], 0 }
   0x2   :  { %9 = vsyncpa [#allocation5], 0  ;;  %s374_s9 = smov [#allocation3]   ;;  %s375_s11 = smov [#allocation6]  }
   0x3   :  { %s16_s10 = sshll.u32 %s374_s9, 4  ;;  %s30_s12 = sshll.u32 %s375_s11, 4  ;;  %s17_s10 = int_to_ptr.vmem [resolvable:$true] %s16_s10  ;;  %s31_s12 = int_to_ptr.vmem [resolvable:$true] %s30_s12 }
   0x4   :  { %s302_s15 = scalar_lea.hbm %s432_s0, 128 }
   0x5   :  { %p303_p0 = scmp.ne.s32.totalorder %s432_s0, %s302_s15  ;;  %p306_p1 = scmp.lt.u32.totalorder %s302_s15, %s432_s0 }
   0x7   :  { %p308_p2 = pnand %p306_p1, %p303_p0 }
   0x9   :  { %311 = shalt.err (!%p308_p2)
}
   0xa   :  { %s312_s20 = scalar_lea.vmem %s17_s10, 128  ;;  %p317_p4 = scmp.lt.s32.totalorder %s17_s10, %s17_s10 }
   0xb   :  { %p313_p3 = scmp.ne.s32.totalorder %s17_s10, %s312_s20  ;;  %p318_p5 = scmp.lt.s32.totalorder %s312_s20, %s312_s20 }
   0xd   :  { %p319_p6 = por %p318_p5, %p317_p4 }
   0xf   :  { %p320_p7 = pnand %p319_p6, %p313_p3 }
  0x11   :  { %323 = shalt.err (!%p320_p7)
}
  0x12   :  { %19 = dma.hbm_to_vmem [thread:$0]  %s432_s0, 128, %s17_s10, [#allocation4]  }
  0x13   :  { %s324_s25 = scalar_lea.hbm %s433_s1, 512 }
  0x14   :  { %p325_p8 = scmp.ne.s32.totalorder %s433_s1, %s324_s25  ;;  %p328_p9 = scmp.lt.u32.totalorder %s324_s25, %s433_s1 }
  0x16   :  { %p330_p10 = pnand %p328_p9, %p325_p8 }
  0x18   :  { %333 = shalt.err (!%p330_p10)
}
  0x19   :  { %s334_s30 = scalar_lea.vmem %s31_s12, 512  ;;  %p339_p12 = scmp.lt.s32.totalorder %s31_s12, %s31_s12 }
  0x1a   :  { %p335_p11 = scmp.ne.s32.totalorder %s31_s12, %s334_s30  ;;  %p340_p13 = scmp.lt.s32.totalorder %s334_s30, %s334_s30 }
  0x1c   :  { %p341_p0 = por %p340_p13, %p339_p12 }
  0x1e   :  { %p342_p1 = pnand %p341_p0, %p335_p11 }
  0x20   :  { %345 = shalt.err (!%p342_p1)
}
  0x21   :  { %33 = dma.hbm_to_vmem [thread:$0]  %s433_s1, 512, %s31_s12, [#allocation7]  }
  0x22   :  { %368 = dma.done.wait [#allocation4], 128  }
  0x23   :  { %369 = vsyncadd [#allocation4], 4294967168 }
  0x24   :  { %370 = dma.done.wait [#allocation7], 512  }
  0x25   :  { %371 = vsyncadd [#allocation7], 4294966784  ;;  %v49_v0 = vld [vmem:[#allocation6] sm:$0xff]  ;;  %v50_v1 = vld [vmem:[#allocation6 + $0x8] sm:$0xff]  ;;  %vm47_vm0 = vcmask 64512   ;;  %v376_v12 = vmov 0.0  }
  0x26   :  { %v51_v2 = vld [vmem:[#allocation6 + $0x10] sm:$0xff]  ;;  %v281_v3 = vcombine.high %v49_v0, %v49_v0  ;;  %v283_v4 = vcombine.high %v50_v1, %v50_v1  ;;  %v280_v5 = vcombine.low %v49_v0, %v49_v0  ;;  %v282_v6 = vcombine.low %v50_v1, %v50_v1  ;;  %v52_v7 = vld [vmem:[#allocation6 + $0x18] sm:$0xff]  ;;  %48 = vst.msk [vmem:[#allocation2] sm:$0xff] %vm47_vm0, %v376_v12  ;;  %s377_s1 = smov [#allocation8]  }
  0x27   :  { %v285_v8 = vcombine.high %v51_v2, %v51_v2  ;;  %v287_v9 = vcombine.high %v52_v7, %v52_v7  ;;  %v284_v10 = vcombine.low %v51_v2, %v51_v2  ;;  %v286_v11 = vcombine.low %v52_v7, %v52_v7  ;;  %v248_v34 = vld [vmem:[#allocation3] sm:$0xff]  ;;  %s270_s4 = sshll.u32 %s377_s1, 4  ;;  %s271_s4 = int_to_ptr.vmem [resolvable:$true] %s270_s4 }
  0x28   :  { %82 = vmatprep.subr.bf16.mxu0 %v281_v3  ;;  %122 = vmatprep.subr.bf16.mxu1 %v283_v4  ;;  %vm262_vm1 = vcmask 0   ;;  %s346_s6 = scalar_lea.vmem %s271_s4, 16  ;;  %s350_s7 = scalar_lea.vmem %s271_s4, 32 }
  0x29   :  { %83 = vmatpush1.bf16.xpose.msra.mxu0 %v280_v5  ;;  %123 = vmatpush1.bf16.xpose.msra.mxu1 %v282_v6  ;;  %p347_p2 = scmp.ne.s32.totalorder %s271_s4, %s346_s6  ;;  %p351_p3 = scmp.lt.s32.totalorder %s271_s4, %s271_s4 }
  0x2a   :  { %114 = vmatprep.mubr.bf16.mxu0 %v281_v3  ;;  %154 = vmatprep.mubr.bf16.mxu1 %v283_v4  ;;  %p352_p4 = scmp.lt.s32.totalorder %s350_s7, %s346_s6 }
  0x2b   :  { %162 = vmatprep.subr.bf16.mxu0 %v285_v8  ;;  %202 = vmatprep.subr.bf16.mxu1 %v287_v9 }
  0x2c   :  { %p353_p5 = por %p352_p4, %p351_p3 }
  0x2d   :  { %v53_v29 = vld [vmem:[#allocation2] sm:$0xff] }
  0x2e   :  { %p354_p6 = pnand %p353_p5, %p347_p2 }
  0x30   :  { %115 = vmatmul.mubr.bf16.vlgmr.msra.gmra.mrb[0].mxu0 %v280_v5  ;;  %155 = vmatmul.mubr.bf16.vlgmr.msra.gmra.mrb[0].mxu1 %v282_v6 }
  0x31   :  { %163 = vmatpush1.bf16.xpose.msra.mxu0 %v284_v10  ;;  %203 = vmatpush1.bf16.xpose.msra.mxu1 %v286_v11 }
  0x32   :  { %194 = vmatprep.mubr.bf16.mxu0 %v285_v8  ;;  %234 = vmatprep.mubr.bf16.mxu1 %v287_v9 }
  0x38   :  { %195 = vmatmul.mubr.bf16.vlgmr.msra.gmra.mrb[4].mxu0 %v284_v10  ;;  %235 = vmatmul.mubr.bf16.vlgmr.msra.gmra.mrb[4].mxu1 %v286_v11 }
 0x103   :  { %v116_v13 = vpop.f32.mrb[0].mxu0  ;;  %v156_v14 = vpop.f32.mrb[0].mxu1 }
 0x104   :  { %v157_v15 = vadd.f32 %v156_v14, %v116_v13  ;;  %v118_v16 = vpop.f32.mrb[1].mxu0  ;;  %v158_v17 = vpop.f32.mrb[1].mxu1 }
 0x105   :  { %v119_v18 = vpop.f32.mrb[2].mxu0  ;;  %v159_v19 = vpop.f32.mrb[2].mxu1 }
 0x106   :  { %v120_v20 = vpop.f32.mrb[3].mxu0  ;;  %v160_v21 = vpop.f32.mrb[3].mxu1 }
 0x10b   :  { %v196_v22 = vpop.f32.mrb[4].mxu0  ;;  %v236_v23 = vpop.f32.mrb[4].mxu1 }
 0x10c   :  { %v197_v24 = vadd.f32 %v196_v22, %v157_v15  ;;  %v198_v25 = vpop.f32.mrb[5].mxu0  ;;  %v238_v26 = vpop.f32.mrb[5].mxu1 }
 0x10d   :  { %v199_v27 = vpop.f32.mrb[6].mxu0  ;;  %v239_v28 = vpop.f32.mrb[6].mxu1 }
 0x10e   :  { %v237_v30 = vadd.f32 %v236_v23, %v197_v24  ;;  %v200_v31 = vpop.f32.mrb[7].mxu0  ;;  %v240_v32 = vpop.f32.mrb[7].mxu1 }
 0x110   :  { %v242_v33 = vadd.f32 %v237_v30, %v53_v29 }
 0x112   :  { %244 = vst.msk [vmem:[#allocation2] sm:$0xff] %vm47_vm0, %v242_v33 }
 0x119   :  { %v249_v35 = vld [vmem:[#allocation2] sm:$0xff] }
 0x11a   :  { %v250_v36 = vmul.f32 %v249_v35, %v248_v34 }
 0x11c   :  { %v251_v37 = vsel %vm47_vm0, %v250_v36, 0.0 }
 0x11d   :  { %252 = vadd.xlane.f32.xlu0 %v251_v37 }
 0x1aa   :  { %v253_v38 = vpop.xlane.xlu0 %252 }
 0x1ab   :  { %v254_v39 = vrot.slane %v253_v38, 4 }
 0x1ad   :  { %v255_v40 = vadd.f32 %v254_v39, %v253_v38 }
 0x1af   :  { %v256_v41 = vrot.slane %v255_v40, 2 }
 0x1b1   :  { %v257_v42 = vadd.f32 %v256_v41, %v255_v40 }
 0x1b3   :  { %v258_v43 = vrot.slane %v257_v42, 1 }
 0x1b5   :  { %v259_v44 = vadd.f32 %v258_v43, %v257_v42 }
 0x1b7   :  { %288 = vpush %v259_v44 }
 0x1e8   :  { %s289_s5 = spop %288 }
 0x1e9   :  { %v261_v45 = vstv %s289_s5 }
 0x1ea   :  { %263 = vst.msk [vmem:[#allocation8] sm:$0x1] %vm262_vm1, %v261_v45 }
 0x1eb   :  { %357 = shalt.err (!%p354_p6)
}
 0x1ec   :  { %s358_s10 = scalar_lea.hbm %s434_s2, 16 }
 0x1ed   :  { %p359_p7 = scmp.ne.s32.totalorder %s434_s2, %s358_s10  ;;  %p362_p8 = scmp.lt.u32.totalorder %s358_s10, %s434_s2 }
 0x1ef   :  { %p364_p9 = pnand %p362_p8, %p359_p7 }
 0x1f1   :  { %367 = shalt.err (!%p364_p9)
}
 0x1f2   :  { %273 = dma.vmem_to_hbm [thread:$0]  %s271_s4, 16, %s434_s2, [#allocation5]  }
 0x1f3   :  { %372 = dma.done.wait [#allocation5], 16  }
 0x1f4   :  { %373 = vsyncadd [#allocation5], 4294967280 }
 0x1f5   :  { %277 = vsyncpa [#allocation4], 1 }
 0x1f6   :  { %278 = vsyncpa [#allocation7], 1 }
 0x1f7   :  { %279 = vsyncpa [#allocation5], 1 }

</bundles_post_ra>
